<compile_context>
chip_gen: v7x
topology: tpu7x:2x2x1
jax: 0.10.0
libtpu: 0.0.40
codegen_flags: <defaults>
</compile_context>

<pallas_src>
import functools

import jax
import jax.numpy as jnp
from jax import lax
from jax.experimental import pallas as pl
from jax.experimental.pallas import tpu as pltpu

_LANES = 128
_SUBLANES = 8


def _tpu_info():
    """Best-effort (physical VMEM bytes, TensorCores per device)."""
    vmem = 128 << 20
    cores = 1
    kind = ""
    try:
        kind = jax.devices()[0].device_kind.lower()
    except Exception:
        pass
    try:
        info = pltpu.get_tpu_info()
        v = getattr(info, "vmem_capacity_bytes", None)
        if v:
            vmem = int(v)
        c = (getattr(info, "num_cores", None)
             or getattr(info, "tensorcore_count", None)
             or getattr(info, "num_tensorcores", None))
        if c:
            cores = int(c)
    except Exception:
        pass
    if ("v7" in kind) or ("tpu7" in kind):
        vmem = min(vmem, 64 << 20)   # v7x: 64 MiB physical VMEM per TC
        cores = max(cores, 2)        # v7x: 2 TensorCores per chip
    return vmem, cores


def _huber_kernel(y1_ref, y2_ref, acc_ref, *, delta, tile_rows, rows_valid,
                  steps, total_blocks, needs_mask):
    p = pl.program_id(0)
    s = pl.program_id(1)

    @pl.when(s == 0)
    def _():
        acc_ref[...] = jnp.zeros_like(acc_ref)

    a = y1_ref[...]
    b = y2_ref[...]
    if a.dtype != jnp.float32:          # static: skip the cast for f32 inputs
        a = a.astype(jnp.float32)
    if b.dtype != jnp.float32:
        b = b.astype(jnp.float32)

    d = a - b
    ad = jnp.abs(d)
    quad = 0.5 * d * d
    if delta == 1.0:                    # specialize: folds to (|d| - 0.5)
        lin = ad - 0.5
    else:
        lin = delta * ad - (0.5 * delta * delta)
    loss = jnp.where(ad < delta, quad, lin)

    def _partial(x):
        # Pure-VPU partial reduction into a single (8, 128) f32 block.
        return x.reshape(-1, _SUBLANES, _LANES).sum(axis=0)

    if not needs_mask:
        acc_ref[...] += _partial(loss)
    else:
        raw = p * steps + s
        boundary = raw >= (total_blocks - 1)

        @pl.when(jnp.logical_not(boundary))
        def _():
            # Interior block: every row is valid, no mask cost.
            acc_ref[...] += _partial(loss)

        @pl.when(boundary)
        def _():
            # Last (possibly partial) block, or a clamped duplicate block
            # (index_map min-clamps over-covered block indices): mask to zero
            # any row beyond the valid row count, and zero duplicates fully.
            blk = jnp.minimum(raw, total_blocks - 1)
            row0 = blk * tile_rows
            local = lax.broadcasted_iota(jnp.int32, loss.shape, 0)
            valid = (local + row0) < rows_valid
            dup = raw > (total_blocks - 1)
            valid = jnp.logical_and(valid, jnp.logical_not(dup))
            acc_ref[...] += _partial(jnp.where(valid, loss, 0.0))


def huber_loss(y1, y2, *, delta=1.0, reduction="mean",
               tile_rows=None, num_parallel=None):
    assert y1.shape == y2.shape, "Huberloss expects same-shaped inputs"
    assert delta > 0.0, "zero-padding/masking trick requires delta > 0"

    n = int(y1.size)
    assert n > 0, "empty input"

    if reduction == "mean":
        scale = 1.0 / float(n)
    elif reduction == "sum":
        scale = 1.0
    else:
        raise ValueError(f"reduction keyword {reduction} is not valid")

    vmem_phys, n_cores = _tpu_info()

    itemsizes = (jnp.dtype(y1.dtype).itemsize, jnp.dtype(y2.dtype).itemsize)
    # Packed-sublane multiple: 8 (f32), 16 (bf16/f16), 32 (int8/fp8).
    sub_mult = max(_SUBLANES, max(max(1, 32 // i) for i in itemsizes))

    # Tile size: ~1/4 of physical VMEM (capped) spent on double-buffered inputs.
    if tile_rows is None:
        budget = min(vmem_phys // 4, 32 << 20)
        tile_rows = budget // (2 * _LANES * (itemsizes[0] + itemsizes[1]))
    tile_rows = max(sub_mult, (int(tile_rows) // sub_mult) * sub_mult)

    # Lane-dense slab. No pad (free reshape) when n is already 128-aligned and
    # has at least one packed sublane group; otherwise pad (full copy) up to a
    # sublane-aligned row count.  Ragged tile boundaries are masked in-kernel.
    rows = -(-n // _LANES)
    if (n % _LANES == 0) and (rows >= sub_mult):
        rows_alloc = rows
        needs_pad = False
    else:
        rows_alloc = -(-max(rows, sub_mult) // sub_mult) * sub_mult
        needs_pad = True
    rows_valid = rows_alloc if needs_pad else rows  # pad rows contribute 0

    tile = min(tile_rows, (rows_alloc // sub_mult) * sub_mult)
    tile = max(tile, sub_mult)
    total_blocks = -(-rows_alloc // tile)

    # Parallel split across TensorCores: one tile per core is enough (v7x).
    if num_parallel is None:
        num_parallel = n_cores
    num_p = max(1, min(int(num_parallel), total_blocks))
    steps = -(-total_blocks // num_p)

    needs_mask = (rows_valid % tile != 0) or (num_p * steps != total_blocks)

    last_blk = total_blocks - 1
    if num_p * steps == total_blocks:
        idx_map = lambda p, s: (p * steps + s, 0)
    else:
        # Clamp over-covered block indices; the kernel zeroes their contribution.
        idx_map = lambda p, s: (jnp.minimum(p * steps + s, last_blk), 0)

    def _to_slab(x):
        flat = jnp.ravel(x)  # native dtype: no upcast, no extra HBM traffic
        if needs_pad:
            # Only hit when n is not 128-lane aligned (or tiny): one pad copy.
            flat = jnp.pad(flat, (0, rows_alloc * _LANES - n))
        return flat.reshape(rows_alloc, _LANES)

    # Explicit scoped-VMEM budget: double-buffered inputs + output + margin,
    # clamped below physical VMEM (generation aware: 64 MiB on v7x).
    in_bytes = 2 * tile * _LANES * (itemsizes[0] + itemsizes[1])
    out_bytes = 2 * num_p * _SUBLANES * _LANES * 4
    vmem_limit = int(min(int(vmem_phys * 0.9),
                         max(32 << 20, in_bytes + out_bytes + (8 << 20))))

    kernel = functools.partial(
        _huber_kernel, delta=float(delta), tile_rows=tile,
        rows_valid=rows_valid, steps=steps, total_blocks=total_blocks,
        needs_mask=needs_mask)

    partials = pl.pallas_call(
        kernel,
        out_shape=jax.ShapeDtypeStruct((num_p * _SUBLANES, _LANES), jnp.float32),
        grid_spec=pltpu.PrefetchScalarGridSpec(
            num_scalar_prefetch=0,
            grid=(num_p, steps),
            in_specs=[
                pl.BlockSpec((tile, _LANES), idx_map),
                pl.BlockSpec((tile, _LANES), idx_map),
            ],
            out_specs=pl.BlockSpec((_SUBLANES, _LANES), lambda p, s: (p, 0)),
        ),
        compiler_params=pltpu.CompilerParams(
            dimension_semantics=("parallel", "arbitrary"),
            vmem_limit_bytes=vmem_limit,
        ),
    )(_to_slab(y1), _to_slab(y2))

    # Tiny lane-dense partial-sum collapse + 'mean'/'sum' scaling in plain JAX.
    return jnp.sum(partials) * scale


def _huber_ref(y1, y2, delta=1.0, reduction="mean"):
    d = y1.astype(jnp.float32) - y2.astype(jnp.float32)
    ad = jnp.abs(d)
    loss = jnp.where(ad < delta, 0.5 * d * d, delta * (ad - 0.5 * delta))
    return loss.mean() if reduction == "mean" else loss.sum()


if __name__ == "__main__":
    key = jax.random.PRNGKey(0)
    k1, k2, k3, k4 = jax.random.split(key, 4)

    # 1) Primary case: NCHW-style regression target, delta=1.0, 'mean'.
    shape = (2, 4, 16, 16)
    y1 = jax.random.normal(k1, shape, dtype=jnp.float32) * 2.0
    y2 = jax.random.normal(k2, shape, dtype=jnp.float32) * 2.0
    out = jax.block_until_ready(huber_loss(y1, y2, delta=1.0, reduction="mean"))
    ref = _huber_ref(y1, y2, delta=1.0, reduction="mean")
    assert jnp.allclose(out, ref, rtol=1e-5, atol=1e-6), (out, ref)

    # 2) 'sum' + odd (non-128-multiple) size -> exercises the pad fallback.
    a = jax.random.normal(k3, (3, 5, 7), dtype=jnp.float32) * 3.0
    b = jax.random.normal(k4, (3, 5, 7), dtype=jnp.float32) * 3.0
    out2 = jax.block_until_ready(huber_loss(a, b, delta=1.0, reduction="sum"))
    ref2 = _huber_ref(a, b, delta=1.0, reduction="sum")
    assert jnp.allclose(out2, ref2, rtol=1e-4, atol=1e-4), (out2, ref2)

    # 3) Multi-step 2-D grid (forced small tiles, 2 "cores").
    y1b = jax.random.normal(k1, (4, 4, 16, 16), dtype=jnp.float32)
    y2b = jax.random.normal(k2, (4, 4, 16, 16), dtype=jnp.float32)
    out3 = jax.block_until_ready(
        huber_loss(y1b, y2b, delta=1.0, reduction="mean",
                   tile_rows=8, num_parallel=2))
    ref3 = _huber_ref(y1b, y2b, delta=1.0, reduction="mean")
    assert jnp.allclose(out3, ref3, rtol=1e-5, atol=1e-6), (out3, ref3)

    # 4) Ragged tiling: 40 rows, tile 16, 2-way split -> in-kernel boundary
    #    mask + clamped duplicate block (no wrapper pad).
    y1c = jax.random.normal(k3, (40, 128), dtype=jnp.float32) * 2.0
    y2c = jax.random.normal(k4, (40, 128), dtype=jnp.float32) * 2.0
    out4 = jax.block_until_ready(
        huber_loss(y1c, y2c, delta=1.0, reduction="sum",
                   tile_rows=16, num_parallel=2))
    ref4 = _huber_ref(y1c, y2c, delta=1.0, reduction="sum")
    assert jnp.allclose(out4, ref4, rtol=1e-4, atol=1e-3), (out4, ref4)

    # 5) bf16 inputs (16-row sublane packing, in-kernel upcast) + delta != 1.
    y1d = (jax.random.normal(k1, (4, 4, 16, 16), dtype=jnp.float32) * 2.0
           ).astype(jnp.bfloat16)
    y2d = (jax.random.normal(k2, (4, 4, 16, 16), dtype=jnp.float32) * 2.0
           ).astype(jnp.bfloat16)
    out5 = jax.block_until_ready(
        huber_loss(y1d, y2d, delta=2.0, reduction="mean"))
    ref5 = _huber_ref(y1d, y2d, delta=2.0, reduction="mean")
    assert jnp.allclose(out5, ref5, rtol=1e-4, atol=1e-5), (out5, ref5)

    print("KERNEL_OK")
</pallas_src>

<mosaic_0001>
module attributes {stable_mosaic.version = 11 : i64} {
  func.func @_huber_kernel(%arg0: i32, %arg1: i32, %arg2: memref<16x128xf32, #tpu.memory_space<vmem>>, %arg3: memref<16x128xf32, #tpu.memory_space<vmem>>, %arg4: memref<8x128xf32, #tpu.memory_space<vmem>>) attributes {dimension_semantics = [#tpu.dimension_semantics<parallel>, #tpu.dimension_semantics<arbitrary>], iteration_bounds = array<i64: 1, 1>, scalar_prefetch = 0 : i64, scratch_operands = 0 : i64, tpu.core_type = #tpu.core_type<tc>, window_params = [{transform_indices = @transform_0, window_bounds = array<i64: 16, 128>}, {transform_indices = @transform_1, window_bounds = array<i64: 16, 128>}, {transform_indices = @transform_2, window_bounds = array<i64: 8, 128>}]} {
    %c0_i32 = arith.constant 0 : i32
    %0 = arith.cmpi eq, %arg1, %c0_i32 : i32
    %1 = arith.extui %0 : i1 to i32
    %c0_i32_0 = arith.constant 0 : i32
    %2 = arith.cmpi ne, %1, %c0_i32_0 : i32
    scf.if %2 {
      %cst_11 = arith.constant 0.000000e+00 : f32
      %20 = vector.broadcast %cst_11 : f32 to vector<8x128xf32>
      %c0_12 = arith.constant 0 : index
      %c0_13 = arith.constant 0 : index
      %21 = vector.load %arg4[%c0_12, %c0_13] : memref<8x128xf32, #tpu.memory_space<vmem>>, vector<8x128xf32>
      tpu.vector_store %arg4[%c0_12, %c0_13], %20 {strides = array<i32>} : memref<8x128xf32, #tpu.memory_space<vmem>>, vector<8x128xf32>,
    } else {
    }
    %c0 = arith.constant 0 : index
    %c0_1 = arith.constant 0 : index
    %3 = vector.load %arg2[%c0, %c0_1] : memref<16x128xf32, #tpu.memory_space<vmem>>, vector<16x128xf32>
    %c0_2 = arith.constant 0 : index
    %c0_3 = arith.constant 0 : index
    %4 = vector.load %arg3[%c0_2, %c0_3] : memref<16x128xf32, #tpu.memory_space<vmem>>, vector<16x128xf32>
    %5 = arith.subf %3, %4 : vector<16x128xf32>
    %6 = math.absf %5 : vector<16x128xf32>
    %cst = arith.constant 5.000000e-01 : f32
    %7 = vector.broadcast %cst : f32 to vector<16x128xf32>
    %8 = arith.mulf %7, %5 : vector<16x128xf32>
    %9 = arith.mulf %8, %5 : vector<16x128xf32>
    %cst_4 = arith.constant 5.000000e-01 : f32
    %10 = vector.broadcast %cst_4 : f32 to vector<16x128xf32>
    %11 = arith.subf %6, %10 : vector<16x128xf32>
    %cst_5 = arith.constant 1.000000e+00 : f32
    %12 = vector.broadcast %cst_5 : f32 to vector<16x128xf32>
    %13 = arith.cmpf olt, %6, %12 : vector<16x128xf32>
    %14 = arith.select %13, %9, %11 : vector<16x128xi1>, vector<16x128xf32>
    %c0_6 = arith.constant 0 : index
    %c0_7 = arith.constant 0 : index
    %15 = vector.load %arg4[%c0_6, %c0_7] : memref<8x128xf32, #tpu.memory_space<vmem>>, vector<8x128xf32>
    %16 = vector.shape_cast %14 : vector<16x128xf32> to vector<2x8x128xf32>
    %cst_8 = arith.constant dense<0.000000e+00> : vector<8x128xf32>
    %17 = vector.multi_reduction <add>, %16, %cst_8 [0] : vector<2x8x128xf32> to vector<8x128xf32>
    %18 = arith.addf %15, %17 : vector<8x128xf32>
    %c0_9 = arith.constant 0 : index
    %c0_10 = arith.constant 0 : index
    %19 = vector.load %arg4[%c0_9, %c0_10] : memref<8x128xf32, #tpu.memory_space<vmem>>, vector<8x128xf32>
    tpu.vector_store %arg4[%c0_9, %c0_10], %18 {strides = array<i32>} : memref<8x128xf32, #tpu.memory_space<vmem>>, vector<8x128xf32>,
    return
  }
  func.func @transform_0(%arg0: i32, %arg1: i32) -> (i32, i32) {
    %c1_i32 = arith.constant 1 : i32
    %0 = arith.muli %arg0, %c1_i32 : i32
    %1 = arith.addi %0, %arg1 : i32
    %c0_i32 = arith.constant 0 : i32
    %c0_i32_0 = arith.constant 0 : i32
    return %1, %c0_i32 : i32, i32
  }
  func.func @transform_1(%arg0: i32, %arg1: i32) -> (i32, i32) {
    %c1_i32 = arith.constant 1 : i32
    %0 = arith.muli %arg0, %c1_i32 : i32
    %1 = arith.addi %0, %arg1 : i32
    %c0_i32 = arith.constant 0 : i32
    %c0_i32_0 = arith.constant 0 : i32
    return %1, %c0_i32 : i32, i32
  }
  func.func @transform_2(%arg0: i32, %arg1: i32) -> (i32, i32) {
    %c0_i32 = arith.constant 0 : i32
    %c0_i32_0 = arith.constant 0 : i32
    return %arg0, %c0_i32 : i32, i32
  }
}

</mosaic_0001>

<bundles_post_ra>
// kernel: tpu_custom_call.1
= control target key start
LH: loop header
LB: loop body
LE: loop exit
PB: predicated region body
PF: predicated region fallthrough
CT: control target
= control target key end

     0   :  { %7 = vsyncpa [#allocation3], 0  ;;  %s231_s0 = inlined_call_operand.hbm [shape: f32[16,128], index: 0, kind: input, shape index: {}]   ;;  %s232_s1 = inlined_call_operand.hbm [shape: f32[16,128], index: 1, kind: input, shape index: {}]   ;;  %s233_s2 = inlined_call_operand.hbm [shape: f32[8,128], index: 2, kind: output, shape index: {}]  }
   0x1   :  { %8 = vsyncpa [#allocation6], 0 }
   0x2   :  { %9 = vsyncpa [#allocation4], 0  ;;  %s175_s9 = smov [#allocation2]   ;;  %s103_s13 = scalar_lea.hbm %s231_s0, 256 }
   0x3   :  { %s19_s10 = sshll.u32 %s175_s9, 4  ;;  %p104_p0 = scmp.ne.s32.totalorder %s231_s0, %s103_s13  ;;  %s20_s10 = int_to_ptr.vmem [resolvable:$true] %s19_s10 }
   0x4   :  { %p107_p1 = scmp.lt.u32.totalorder %s103_s13, %s231_s0 }
   0x6   :  { %p109_p2 = pnand %p107_p1, %p104_p0 }
   0x8   :  { %112 = shalt.err (!%p109_p2)
}
   0x9   :  { %s113_s18 = scalar_lea.vmem %s20_s10, 256  ;;  %p118_p4 = scmp.lt.s32.totalorder %s20_s10, %s20_s10 }
   0xa   :  { %p114_p3 = scmp.ne.s32.totalorder %s20_s10, %s113_s18  ;;  %p119_p5 = scmp.lt.s32.totalorder %s113_s18, %s113_s18 }
   0xc   :  { %p120_p6 = por %p119_p5, %p118_p4 }
   0xe   :  { %p121_p7 = pnand %p120_p6, %p114_p3 }
  0x10   :  { %124 = shalt.err (!%p121_p7)
}
  0x11   :  { %s176_s19 = smov 128   ;;  %s177_s20 = smov 8  }
  0x12   :  { %25 = dma.hbm_to_vmem [thread:$0]  %s231_s0, 256, %s20_s10, [#allocation3], %s176_s19, %s176_s19, %s177_s20  }
  0x13   :  { %s178_s23 = smov [#allocation5]   ;;  %s125_s27 = scalar_lea.hbm %s232_s1, 256 }
  0x14   :  { %s35_s24 = sshll.u32 %s178_s23, 4  ;;  %p126_p8 = scmp.ne.s32.totalorder %s232_s1, %s125_s27  ;;  %s36_s24 = int_to_ptr.vmem [resolvable:$true] %s35_s24 }
  0x15   :  { %p129_p9 = scmp.lt.u32.totalorder %s125_s27, %s232_s1 }
  0x17   :  { %p131_p10 = pnand %p129_p9, %p126_p8 }
  0x19   :  { %134 = shalt.err (!%p131_p10)
}
  0x1a   :  { %s135_s4 = scalar_lea.vmem %s36_s24, 256  ;;  %p140_p12 = scmp.lt.s32.totalorder %s36_s24, %s36_s24 }
  0x1b   :  { %p136_p11 = scmp.ne.s32.totalorder %s36_s24, %s135_s4  ;;  %p141_p13 = scmp.lt.s32.totalorder %s135_s4, %s135_s4 }
  0x1d   :  { %p142_p0 = por %p141_p13, %p140_p12 }
  0x1f   :  { %p143_p1 = pnand %p142_p0, %p136_p11 }
  0x21   :  { %146 = shalt.err (!%p143_p1)
}
  0x22   :  { %41 = dma.hbm_to_vmem [thread:$0]  %s232_s1, 256, %s36_s24, [#allocation6], %s176_s19, %s176_s19, %s177_s20  }
  0x23   :  { %169 = dma.done.wait [#allocation3], 256  }
  0x24   :  { %170 = vsyncadd [#allocation3], 4294967040 }
  0x25   :  { %171 = dma.done.wait [#allocation6], 256  }
  0x26   :  { %172 = vsyncadd [#allocation6], 4294967040  ;;  %v57_v0 = vld [vmem:[#allocation2] sm:$0xff]  ;;  %v58_v1 = vld [vmem:[#allocation2 + $0x8] sm:$0xff]  ;;  %s179_s1 = smov [#allocation7]  }
  0x27   :  { %v59_v2 = vld [vmem:[#allocation5] sm:$0xff]  ;;  %v60_v3 = vld [vmem:[#allocation5 + $0x8] sm:$0xff]  ;;  %s85_s6 = sshll.u32 %s179_s1, 4  ;;  %s86_s6 = int_to_ptr.vmem [resolvable:$true] %s85_s6 }
  0x28   :  { %v61_v4 = vsub.f32 %v57_v0, %v59_v2  ;;  %v62_v5 = vsub.f32 %v58_v1, %v60_v3  ;;  %s147_s7 = scalar_lea.vmem %s86_s6, 128  ;;  %p152_p3 = scmp.lt.s32.totalorder %s86_s6, %s86_s6 }
  0x29   :  { %p148_p2 = scmp.ne.s32.totalorder %s86_s6, %s147_s7  ;;  %p153_p4 = scmp.lt.s32.totalorder %s147_s7, %s147_s7 }
  0x2a   :  { %v63_v6 = vand.u32 2147483647, %v61_v4  ;;  %v65_v7 = vmul.f32 0.5, %v61_v4  ;;  %v64_v8 = vand.u32 2147483647, %v62_v5  ;;  %v66_v9 = vmul.f32 0.5, %v62_v5 }
  0x2b   :  { %p154_p5 = por %p153_p4, %p152_p3 }
  0x2c   :  { %v67_v10 = vmul.f32 %v65_v7, %v61_v4  ;;  %v95_v11 = vadd.f32 -0.5, %v63_v6  ;;  %vm71_vm0 = vcmp.lt.f32.partialorder %v63_v6, 1.0  ;;  %v68_v12 = vmul.f32 %v66_v9, %v62_v5 }
  0x2d   :  { %v96_v13 = vadd.f32 -0.5, %v64_v8  ;;  %vm72_vm1 = vcmp.lt.f32.partialorder %v64_v8, 1.0  ;;  %p155_p6 = pnand %p154_p5, %p148_p2 }
  0x2e   :  { %v73_v14 = vsel %vm71_vm0, %v67_v10, %v95_v11 }
  0x2f   :  { %v74_v15 = vsel %vm72_vm1, %v68_v12, %v96_v13 }
  0x30   :  { %v76_v16 = vadd.f32 %v74_v15, %v73_v14 }
  0x32   :  { %78 = vst [vmem:[#allocation7] sm:$0xff] %v76_v16 }
  0x33   :  { %158 = shalt.err (!%p155_p6)
}
  0x34   :  { %s159_s10 = scalar_lea.hbm %s233_s2, 128 }
  0x35   :  { %p160_p7 = scmp.ne.s32.totalorder %s233_s2, %s159_s10  ;;  %p163_p8 = scmp.lt.u32.totalorder %s159_s10, %s233_s2 }
  0x37   :  { %p165_p9 = pnand %p163_p8, %p160_p7 }
  0x39   :  { %168 = shalt.err (!%p165_p9)
}
  0x3a   :  { %88 = dma.vmem_to_hbm [thread:$0]  %s86_s6, 128, %s233_s2, [#allocation4]  }
  0x3b   :  { %173 = dma.done.wait [#allocation4], 128  }
  0x3c   :  { %174 = vsyncadd [#allocation4], 4294967168 }
  0x3d   :  { %92 = vsyncpa [#allocation3], 1 }
  0x3e   :  { %93 = vsyncpa [#allocation6], 1 }
  0x3f   :  { %94 = vsyncpa [#allocation4], 1 }

</bundles_post_ra>
